<compile_context>
chip_gen: v6e
topology: v6e:2x2x1
jax: 0.10.0
libtpu: 0.0.40
codegen_flags: <defaults>
</compile_context>

<pallas_src>
import functools

import jax
import jax.numpy as jnp
from jax import lax
from jax.experimental import pallas as pl
from jax.experimental.pallas import tpu as pltpu

LN_EPS = 1e-5  # PyTorch nn.LayerNorm default


def _round_up(x, m):
    return (x + m - 1) // m * m


def _ln_relu(x, gamma, beta, true_dim):
    """LayerNorm over the last (lane) axis + ReLU, with lane padding masked.

    Uses the numerically preferable two-pass (x - mu)^2 variance form; lanes
    beyond `true_dim` are zeroed before the variance sum so zero-padding does
    not perturb the statistics.  Padded gamma/beta entries are zero, so padded
    output lanes are exactly 0.
    """
    d_pad = x.shape[-1]
    inv = jnp.float32(1.0 / true_dim)
    mu = jnp.sum(x, axis=-1, keepdims=True) * inv
    diff = x - mu
    if true_dim != d_pad:
        lane = lax.broadcasted_iota(jnp.int32, x.shape, x.ndim - 1)
        diff = jnp.where(lane < true_dim, diff, 0.0)
    var = jnp.sum(diff * diff, axis=-1, keepdims=True) * inv
    xn = diff * lax.rsqrt(var + LN_EPS)
    return jnp.maximum(xn * gamma + beta, 0.0)


# --------------------------------------------------------------------------
# Kernel 1: one-time (r_pos_pad, M_pad) output table:  LN -> ReLU -> FFN -> LN -> ReLU
# --------------------------------------------------------------------------
def _table_kernel(emb_ref, w_ref, b_ref, g1_ref, be1_ref, g2_ref, be2_ref,
                  tbl_ref, *, e_true, m_true):
    x = emb_ref[...]                                           # (tile_r, E_pad) f32
    xn = _ln_relu(x, g1_ref[...], be1_ref[...], e_true)
    y = jnp.dot(xn, w_ref[...], preferred_element_type=jnp.float32) + b_ref[...]
    tbl_ref[...] = _ln_relu(y, g2_ref[...], be2_ref[...], m_true)


# --------------------------------------------------------------------------
# Kernel 2: per-token gather (pure output-bandwidth stream).
# --------------------------------------------------------------------------
def _gather_kernel(idx_ref, tbl_ref, o_ref, *, r_pos_pad):
    idx = idx_ref[0]                                           # (1, T) int32, lane-dense
    t = o_ref.shape[0]
    # One-hot built in (r_pos_pad, T) orientation directly from the lane-dense
    # index row (sublane-iota compare); the lhs-transposed dot_general contracts
    # the r_pos axis on the MXU -> (T, M_pad).
    p_iota = lax.broadcasted_iota(jnp.int32, (r_pos_pad, t), 0)
    onehot_t = (p_iota == idx).astype(jnp.float32)             # (r_pos_pad, T)
    out = lax.dot_general(onehot_t, tbl_ref[...],
                          dimension_numbers=(((0,), (0,)), ((), ())),
                          preferred_element_type=jnp.float32)  # (T, M_pad)
    o_ref[...] = out.astype(o_ref.dtype)


# --------------------------------------------------------------------------
# One-time parameter preparation: pad params, build the output table.
# --------------------------------------------------------------------------
def prepare_region_embedder(params, *, table_row_tile=512):
    emb = jnp.asarray(params["embedding"], jnp.float32)        # (r_pos, E)
    w = jnp.asarray(params["ffn_w"], jnp.float32)              # (E, M)
    b = jnp.asarray(params["ffn_b"], jnp.float32).reshape(1, -1)
    g1 = jnp.asarray(params["ln1_g"], jnp.float32).reshape(1, -1)
    be1 = jnp.asarray(params["ln1_b"], jnp.float32).reshape(1, -1)
    g2 = jnp.asarray(params["ln2_g"], jnp.float32).reshape(1, -1)
    be2 = jnp.asarray(params["ln2_b"], jnp.float32).reshape(1, -1)

    r_pos, E = emb.shape
    M = w.shape[1]
    E_pad = _round_up(E, 128)
    M_pad = _round_up(M, 128)
    tile_r = min(table_row_tile, _round_up(r_pos, 8))
    r_pos_pad = _round_up(r_pos, tile_r)

    # Zero-padded params (padded gamma/beta/weight entries are zero so padded
    # lanes of the table are exact zeros).  Done ONCE here, not per forward.
    emb_p = jnp.zeros((r_pos_pad, E_pad), jnp.float32).at[:r_pos, :E].set(emb)
    w_p = jnp.zeros((E_pad, M_pad), jnp.float32).at[:E, :M].set(w)
    b_p = jnp.zeros((1, M_pad), jnp.float32).at[:, :M].set(b)
    g1_p = jnp.zeros((1, E_pad), jnp.float32).at[:, :E].set(g1)
    be1_p = jnp.zeros((1, E_pad), jnp.float32).at[:, :E].set(be1)
    g2_p = jnp.zeros((1, M_pad), jnp.float32).at[:, :M].set(g2)
    be2_p = jnp.zeros((1, M_pad), jnp.float32).at[:, :M].set(be2)

    const = lambda i: (0, 0)
    table = pl.pallas_call(
        functools.partial(_table_kernel, e_true=E, m_true=M),
        out_shape=jax.ShapeDtypeStruct((r_pos_pad, M_pad), jnp.float32),
        grid_spec=pltpu.PrefetchScalarGridSpec(
            num_scalar_prefetch=0,
            grid=(r_pos_pad // tile_r,),
            in_specs=[
                pl.BlockSpec((tile_r, E_pad), lambda i: (i, 0)),   # embedding rows
                pl.BlockSpec((E_pad, M_pad), const),               # ffn weight (f32)
                pl.BlockSpec((1, M_pad), const),                   # ffn bias
                pl.BlockSpec((1, E_pad), const),                   # ln1 gamma
                pl.BlockSpec((1, E_pad), const),                   # ln1 beta
                pl.BlockSpec((1, M_pad), const),                   # ln2 gamma
                pl.BlockSpec((1, M_pad), const),                   # ln2 beta
            ],
            out_specs=pl.BlockSpec((tile_r, M_pad), lambda i: (i, 0)),
        ),
        compiler_params=pltpu.CompilerParams(
            dimension_semantics=("parallel",),
        ),
    )(emb_p, w_p, b_p, g1_p, be1_p, g2_p, be2_p)

    return {"table": table, "r_pos": r_pos, "E": E, "M": M,
            "M_pad": M_pad, "r_pos_pad": r_pos_pad}


# --------------------------------------------------------------------------
# Per-call forward: pure gather of the precomputed table.
# --------------------------------------------------------------------------
def region_embedder_apply(pos_seq, prepped, *, tile_rows=2048,
                          out_dtype=jnp.float32):
    """pos_seq: (B, L) int indices. Returns (B, L, r_model) in out_dtype."""
    table = prepped["table"]
    r_pos_pad, M_pad = table.shape
    M = prepped["M"]
    B, L = pos_seq.shape
    n_rows = B * L

    # Large row tiles amortize the ~0.35us/step pipeline overhead; clamp for
    # tiny inputs and keep >=2 grid tiles when possible (v7x megacore).
    tile_rows = max(8, min(_round_up(int(tile_rows), 8), _round_up(n_rows, 8)))
    while tile_rows > 256 and pl.cdiv(n_rows, tile_rows) < 2:
        tile_rows //= 2
    n_rows_pad = _round_up(n_rows, tile_rows)
    num_tiles = n_rows_pad // tile_rows

    flat = pos_seq.reshape(-1).astype(jnp.int32)
    if n_rows_pad != n_rows:
        flat = jnp.concatenate(
            [flat, jnp.zeros((n_rows_pad - n_rows,), jnp.int32)])
    idx = flat.reshape(num_tiles, 1, tile_rows)        # lane-dense positions

    # Explicit VMEM budget (never just "request 64 MiB"): double-buffered
    # output + idx blocks, single-buffered resident table, one-hot / result
    # temporaries, 2x slack.  Capped at 48 MiB (v7x TC has 64 MiB physical).
    out_bytes = jnp.dtype(out_dtype).itemsize
    budget = (2 * tile_rows * M_pad * out_bytes
              + 2 * tile_rows * 4
              + r_pos_pad * M_pad * 4
              + tile_rows * (r_pos_pad + M_pad) * 4)
    vmem_limit = int(min(max(2 * budget, 32 << 20), 48 << 20))

    out_flat = pl.pallas_call(
        functools.partial(_gather_kernel, r_pos_pad=r_pos_pad),
        out_shape=jax.ShapeDtypeStruct((n_rows_pad, M_pad), out_dtype),
        grid_spec=pltpu.PrefetchScalarGridSpec(
            num_scalar_prefetch=0,
            grid=(num_tiles,),
            in_specs=[
                pl.BlockSpec((1, 1, tile_rows), lambda i: (i, 0, 0)),
                # Resident constant table: fetched once, single-buffered.
                # TODO(synk): for very large r_pos switch to a manual DMA row
                # gather (memory_space=pl.ANY + make_async_copy).
                pl.BlockSpec((r_pos_pad, M_pad), lambda i: (0, 0),
                             pipeline_mode=pl.Buffered(1)),
            ],
            out_specs=pl.BlockSpec((tile_rows, M_pad), lambda i: (i, 0)),
        ),
        compiler_params=pltpu.CompilerParams(
            dimension_semantics=("parallel",),
            vmem_limit_bytes=vmem_limit,
        ),
    )(idx, table)

    if n_rows_pad == n_rows and M_pad == M:
        # Zero-copy path: no post-kernel slice (hit when M % 128 == 0 and the
        # row tiling divides B*L exactly).
        return out_flat.reshape(B, L, M)
    # TODO(synk): consumers that accept a lane-padded (B, L, M_pad) output can
    # skip this de-pad slice entirely.
    return out_flat[:n_rows, :M].reshape(B, L, M)


def region_embedder_forward(pos_seq, params, *, tile_rows=2048,
                            out_dtype=jnp.float32):
    """Drop-in convenience wrapper (prepare + apply each call).  Prefer calling
    prepare_region_embedder once and region_embedder_apply per forward."""
    prepped = prepare_region_embedder(params)
    return region_embedder_apply(pos_seq, prepped, tile_rows=tile_rows,
                                 out_dtype=out_dtype)


# --------------------------------------------------------------------------
# Synthetic parameters + pure-JAX reference of the PyTorch forward.
# --------------------------------------------------------------------------
def init_params(key, r_pos, r_embedding, r_model):
    k_emb, k_w, k_b = jax.random.split(key, 3)
    embedding = jax.random.normal(k_emb, (r_pos, r_embedding), jnp.float32)
    # PositionFeedForward(rank=None) == Conv1d(E, M, 1); stored pre-transposed
    # as (E, M) for the row-major matmul.
    ffn_w = jax.random.normal(k_w, (r_embedding, r_model), jnp.float32) * 0.1
    ffn_b = jax.random.normal(k_b, (1, r_model), jnp.float32) * 0.1
    return {
        "embedding": embedding,
        "ffn_w": ffn_w,
        "ffn_b": ffn_b,
        "ln1_g": jnp.ones((1, r_embedding), jnp.float32),
        "ln1_b": jnp.zeros((1, r_embedding), jnp.float32),
        "ln2_g": jnp.ones((1, r_model), jnp.float32),
        "ln2_b": jnp.zeros((1, r_model), jnp.float32),
    }


def _reference(pos_seq, params):
    x = jnp.take(params["embedding"], pos_seq, axis=0)
    mu = x.mean(-1, keepdims=True)
    var = ((x - mu) ** 2).mean(-1, keepdims=True)
    x = (x - mu) / jnp.sqrt(var + LN_EPS)
    x = x * params["ln1_g"][0] + params["ln1_b"][0]
    x = jnp.maximum(x, 0.0)
    x = jnp.dot(x, params["ffn_w"],
                precision=lax.Precision.HIGHEST) + params["ffn_b"][0]
    mu = x.mean(-1, keepdims=True)
    var = ((x - mu) ** 2).mean(-1, keepdims=True)
    x = (x - mu) / jnp.sqrt(var + LN_EPS)
    x = x * params["ln2_g"][0] + params["ln2_b"][0]
    return jnp.maximum(x, 0.0)


if __name__ == "__main__":
    r_pos, r_embedding, r_model = 10, 32, 64
    B, L = 2, 8

    key = jax.random.PRNGKey(0)
    k_params, k_seq = jax.random.split(key)
    params = init_params(k_params, r_pos, r_embedding, r_model)
    pos_seq = jax.random.randint(k_seq, (B, L), 0, r_pos, dtype=jnp.int32)

    prepped = prepare_region_embedder(params)       # one-time: pad + table kernel
    out = region_embedder_apply(pos_seq, prepped)   # per-call: gather kernel
    out = jax.block_until_ready(out)

    ref = _reference(pos_seq, params)
    assert out.shape == (B, L, r_model), f"bad shape {out.shape}"
    err = float(jnp.max(jnp.abs(out - ref)))
    assert err < 2e-2, f"mismatch vs reference (max abs err {err:.3e})"
    print("KERNEL_OK")
</pallas_src>

<mosaic_0001>
module attributes {stable_mosaic.version = 11 : i64} {
  func.func @_table_kernel(%arg0: i32, %arg1: memref<16x128xf32, #tpu.memory_space<vmem>>, %arg2: memref<128x128xf32, #tpu.memory_space<vmem>>, %arg3: memref<1x128xf32, #tpu.memory_space<vmem>>, %arg4: memref<1x128xf32, #tpu.memory_space<vmem>>, %arg5: memref<1x128xf32, #tpu.memory_space<vmem>>, %arg6: memref<1x128xf32, #tpu.memory_space<vmem>>, %arg7: memref<1x128xf32, #tpu.memory_space<vmem>>, %arg8: memref<16x128xf32, #tpu.memory_space<vmem>>) attributes {dimension_semantics = [#tpu.dimension_semantics<parallel>], iteration_bounds = array<i64: 1>, scalar_prefetch = 0 : i64, scratch_operands = 0 : i64, tpu.core_type = #tpu.core_type<tc>, window_params = [{transform_indices = @transform_0, window_bounds = array<i64: 16, 128>}, {pipeline_mode = #tpu.pipeline_mode<synchronous>, transform_indices = @transform_1, window_bounds = array<i64: 128, 128>}, {pipeline_mode = #tpu.pipeline_mode<synchronous>, transform_indices = @transform_2, window_bounds = array<i64: 1, 128>}, {pipeline_mode = #tpu.pipeline_mode<synchronous>, transform_indices = @transform_3, window_bounds = array<i64: 1, 128>}, {pipeline_mode = #tpu.pipeline_mode<synchronous>, transform_indices = @transform_4, window_bounds = array<i64: 1, 128>}, {pipeline_mode = #tpu.pipeline_mode<synchronous>, transform_indices = @transform_5, window_bounds = array<i64: 1, 128>}, {pipeline_mode = #tpu.pipeline_mode<synchronous>, transform_indices = @transform_6, window_bounds = array<i64: 1, 128>}, {transform_indices = @transform_7, window_bounds = array<i64: 16, 128>}]} {
    %c0 = arith.constant 0 : index
    %c0_0 = arith.constant 0 : index
    %0 = vector.load %arg1[%c0, %c0_0] : memref<16x128xf32, #tpu.memory_space<vmem>>, vector<16x128xf32>
    %c0_1 = arith.constant 0 : index
    %c0_2 = arith.constant 0 : index
    %1 = vector.load %arg4[%c0_1, %c0_2] : memref<1x128xf32, #tpu.memory_space<vmem>>, vector<1x128xf32>
    %c0_3 = arith.constant 0 : index
    %c0_4 = arith.constant 0 : index
    %2 = vector.load %arg5[%c0_3, %c0_4] : memref<1x128xf32, #tpu.memory_space<vmem>>, vector<1x128xf32>
    %cst = arith.constant dense<0.000000e+00> : vector<16xf32>
    %3 = vector.multi_reduction <add>, %0, %cst [1] : vector<16x128xf32> to vector<16xf32>
    %4 = vector.shape_cast %3 : vector<16xf32> to vector<16x1xf32>
    %cst_5 = arith.constant 3.125000e-02 : f32
    %5 = vector.broadcast %cst_5 : f32 to vector<16x1xf32>
    %6 = arith.mulf %4, %5 : vector<16x1xf32>
    %7 = vector.broadcast %6 : vector<16x1xf32> to vector<16x128xf32>
    %8 = arith.subf %0, %7 : vector<16x128xf32>
    %9 = tpu.iota {dimensions = array<i32: 1>} : vector<16x128xi32>
    %c32_i32 = arith.constant 32 : i32
    %10 = vector.broadcast %c32_i32 : i32 to vector<16x128xi32>
    %11 = arith.cmpi slt, %9, %10 : vector<16x128xi32>
    %cst_6 = arith.constant 0.000000e+00 : f32
    %12 = vector.broadcast %cst_6 : f32 to vector<16x128xf32>
    %13 = arith.select %11, %8, %12 : vector<16x128xi1>, vector<16x128xf32>
    %14 = arith.mulf %13, %13 : vector<16x128xf32>
    %cst_7 = arith.constant dense<0.000000e+00> : vector<16xf32>
    %15 = vector.multi_reduction <add>, %14, %cst_7 [1] : vector<16x128xf32> to vector<16xf32>
    %16 = vector.shape_cast %15 : vector<16xf32> to vector<16x1xf32>
    %cst_8 = arith.constant 3.125000e-02 : f32
    %17 = vector.broadcast %cst_8 : f32 to vector<16x1xf32>
    %18 = arith.mulf %16, %17 : vector<16x1xf32>
    %cst_9 = arith.constant 9.99999974E-6 : f32
    %19 = vector.broadcast %cst_9 : f32 to vector<16x1xf32>
    %20 = arith.addf %18, %19 : vector<16x1xf32>
    %21 = math.rsqrt %20 : vector<16x1xf32>
    %22 = vector.broadcast %21 : vector<16x1xf32> to vector<16x128xf32>
    %23 = arith.mulf %13, %22 : vector<16x128xf32>
    %24 = vector.broadcast %1 : vector<1x128xf32> to vector<16x128xf32>
    %25 = arith.mulf %23, %24 : vector<16x128xf32>
    %26 = vector.broadcast %2 : vector<1x128xf32> to vector<16x128xf32>
    %27 = arith.addf %25, %26 : vector<16x128xf32>
    %cst_10 = arith.constant 0.000000e+00 : f32
    %28 = vector.broadcast %cst_10 : f32 to vector<16x128xf32>
    %29 = arith.maximumf %27, %28 : vector<16x128xf32>
    %c0_11 = arith.constant 0 : index
    %c0_12 = arith.constant 0 : index
    %30 = vector.load %arg2[%c0_11, %c0_12] : memref<128x128xf32, #tpu.memory_space<vmem>>, vector<128x128xf32>
    %cst_13 = arith.constant dense<0.000000e+00> : vector<16x128xf32>
    %31 = tpu.matmul %29, %30, %cst_13 {dimension_numbers = #tpu.dot_dimension_numbers<[1], [0], [0], [1], [0, 0, 1, 1], [], []>} : vector<16x128xf32>, vector<128x128xf32>, vector<16x128xf32> -> vector<16x128xf32>
    %c0_14 = arith.constant 0 : index
    %c0_15 = arith.constant 0 : index
    %32 = vector.load %arg3[%c0_14, %c0_15] : memref<1x128xf32, #tpu.memory_space<vmem>>, vector<1x128xf32>
    %33 = vector.broadcast %32 : vector<1x128xf32> to vector<16x128xf32>
    %34 = arith.addf %31, %33 : vector<16x128xf32>
    %c0_16 = arith.constant 0 : index
    %c0_17 = arith.constant 0 : index
    %35 = vector.load %arg6[%c0_16, %c0_17] : memref<1x128xf32, #tpu.memory_space<vmem>>, vector<1x128xf32>
    %c0_18 = arith.constant 0 : index
    %c0_19 = arith.constant 0 : index
    %36 = vector.load %arg7[%c0_18, %c0_19] : memref<1x128xf32, #tpu.memory_space<vmem>>, vector<1x128xf32>
    %cst_20 = arith.constant dense<0.000000e+00> : vector<16xf32>
    %37 = vector.multi_reduction <add>, %34, %cst_20 [1] : vector<16x128xf32> to vector<16xf32>
    %38 = vector.shape_cast %37 : vector<16xf32> to vector<16x1xf32>
    %cst_21 = arith.constant 1.562500e-02 : f32
    %39 = vector.broadcast %cst_21 : f32 to vector<16x1xf32>
    %40 = arith.mulf %38, %39 : vector<16x1xf32>
    %41 = vector.broadcast %40 : vector<16x1xf32> to vector<16x128xf32>
    %42 = arith.subf %34, %41 : vector<16x128xf32>
    %43 = tpu.iota {dimensions = array<i32: 1>} : vector<16x128xi32>
    %c64_i32 = arith.constant 64 : i32
    %44 = vector.broadcast %c64_i32 : i32 to vector<16x128xi32>
    %45 = arith.cmpi slt, %43, %44 : vector<16x128xi32>
    %cst_22 = arith.constant 0.000000e+00 : f32
    %46 = vector.broadcast %cst_22 : f32 to vector<16x128xf32>
    %47 = arith.select %45, %42, %46 : vector<16x128xi1>, vector<16x128xf32>
    %48 = arith.mulf %47, %47 : vector<16x128xf32>
    %cst_23 = arith.constant dense<0.000000e+00> : vector<16xf32>
    %49 = vector.multi_reduction <add>, %48, %cst_23 [1] : vector<16x128xf32> to vector<16xf32>
    %50 = vector.shape_cast %49 : vector<16xf32> to vector<16x1xf32>
    %cst_24 = arith.constant 1.562500e-02 : f32
    %51 = vector.broadcast %cst_24 : f32 to vector<16x1xf32>
    %52 = arith.mulf %50, %51 : vector<16x1xf32>
    %cst_25 = arith.constant 9.99999974E-6 : f32
    %53 = vector.broadcast %cst_25 : f32 to vector<16x1xf32>
    %54 = arith.addf %52, %53 : vector<16x1xf32>
    %55 = math.rsqrt %54 : vector<16x1xf32>
    %56 = vector.broadcast %55 : vector<16x1xf32> to vector<16x128xf32>
    %57 = arith.mulf %47, %56 : vector<16x128xf32>
    %58 = vector.broadcast %35 : vector<1x128xf32> to vector<16x128xf32>
    %59 = arith.mulf %57, %58 : vector<16x128xf32>
    %60 = vector.broadcast %36 : vector<1x128xf32> to vector<16x128xf32>
    %61 = arith.addf %59, %60 : vector<16x128xf32>
    %cst_26 = arith.constant 0.000000e+00 : f32
    %62 = vector.broadcast %cst_26 : f32 to vector<16x128xf32>
    %63 = arith.maximumf %61, %62 : vector<16x128xf32>
    %c0_27 = arith.constant 0 : index
    %c0_28 = arith.constant 0 : index
    %64 = vector.load %arg8[%c0_27, %c0_28] : memref<16x128xf32, #tpu.memory_space<vmem>>, vector<16x128xf32>
    tpu.vector_store %arg8[%c0_27, %c0_28], %63 {strides = array<i32>} : memref<16x128xf32, #tpu.memory_space<vmem>>, vector<16x128xf32>,
    return
  }
  func.func @transform_0(%arg0: i32) -> (i32, i32) {
    %c0_i32 = arith.constant 0 : i32
    %c0_i32_0 = arith.constant 0 : i32
    return %arg0, %c0_i32 : i32, i32
  }
  func.func @transform_1(%arg0: i32) -> (i32, i32) {
    %c0_i32 = arith.constant 0 : i32
    %c0_i32_0 = arith.constant 0 : i32
    %c0_i32_1 = arith.constant 0 : i32
    return %c0_i32, %c0_i32_0 : i32, i32
  }
  func.func @transform_2(%arg0: i32) -> (i32, i32) {
    %c0_i32 = arith.constant 0 : i32
    %c0_i32_0 = arith.constant 0 : i32
    %c0_i32_1 = arith.constant 0 : i32
    return %c0_i32, %c0_i32_0 : i32, i32
  }
  func.func @transform_3(%arg0: i32) -> (i32, i32) {
    %c0_i32 = arith.constant 0 : i32
    %c0_i32_0 = arith.constant 0 : i32
    %c0_i32_1 = arith.constant 0 : i32
    return %c0_i32, %c0_i32_0 : i32, i32
  }
  func.func @transform_4(%arg0: i32) -> (i32, i32) {
    %c0_i32 = arith.constant 0 : i32
    %c0_i32_0 = arith.constant 0 : i32
    %c0_i32_1 = arith.constant 0 : i32
    return %c0_i32, %c0_i32_0 : i32, i32
  }
  func.func @transform_5(%arg0: i32) -> (i32, i32) {
    %c0_i32 = arith.constant 0 : i32
    %c0_i32_0 = arith.constant 0 : i32
    %c0_i32_1 = arith.constant 0 : i32
    return %c0_i32, %c0_i32_0 : i32, i32
  }
  func.func @transform_6(%arg0: i32) -> (i32, i32) {
    %c0_i32 = arith.constant 0 : i32
    %c0_i32_0 = arith.constant 0 : i32
    %c0_i32_1 = arith.constant 0 : i32
    return %c0_i32, %c0_i32_0 : i32, i32
  }
  func.func @transform_7(%arg0: i32) -> (i32, i32) {
    %c0_i32 = arith.constant 0 : i32
    %c0_i32_0 = arith.constant 0 : i32
    return %arg0, %c0_i32 : i32, i32
  }
}

</mosaic_0001>

<bundles_post_ra>
// kernel: tpu_custom_call.1
= control target key start
LH: loop header
LB: loop body
LE: loop exit
PB: predicated region body
PF: predicated region fallthrough
CT: control target
= control target key end

     0   :  { %12 = vsyncpa [#allocation3], 0  ;;  %s486_s0 = inlined_call_operand.hbm [shape: f32[16,128], index: 0, kind: input, shape index: {}]   ;;  %s487_s1 = inlined_call_operand.hbm [shape: f32[128,128], index: 1, kind: input, shape index: {}]   ;;  %s488_s2 = inlined_call_operand.vmem [shape: f32[1,128], index: 2, kind: input, shape index: {}]   ;;  %s489_s3 = inlined_call_operand.vmem [shape: f32[1,128], index: 3, kind: input, shape index: {}]   ;;  %s490_s4 = inlined_call_operand.vmem [shape: f32[1,128], index: 4, kind: input, shape index: {}]   ;;  %s491_s5 = inlined_call_operand.vmem [shape: f32[1,128], index: 5, kind: input, shape index: {}]   ;;  %s492_s6 = inlined_call_operand.vmem [shape: f32[1,128], index: 6, kind: input, shape index: {}]   ;;  %s493_s7 = inlined_call_operand.hbm [shape: f32[16,128], index: 7, kind: output, shape index: {}]  }
   0x1   :  { %13 = vsyncpa [#allocation6], 0 }
   0x2   :  { %14 = vsyncpa [#allocation4], 0  ;;  %s404_s24 = smov [#allocation2]  }
   0x3   :  { %s20_s25 = sshll.u32 %s404_s24, 4  ;;  %s21_s25 = int_to_ptr.vmem [resolvable:$true] %s20_s25 }
   0x4   :  { %s346_s26 = scalar_lea.vmem %s21_s25, 256  ;;  %p351_p1 = scmp.lt.s32.totalorder %s21_s25, %s21_s25 }
   0x5   :  { %p347_p0 = scmp.ne.s32.totalorder %s21_s25, %s346_s26  ;;  %p352_p2 = scmp.lt.s32.totalorder %s346_s26, %s346_s26 }
   0x7   :  { %p353_p3 = por %p352_p2, %p351_p1 }
   0x9   :  { %p354_p4 = pnand %p353_p3, %p347_p0 }
   0xb   :  { %357 = shalt.err (!%p354_p4)
}
   0xc   :  { %s405_s27 = smov 128   ;;  %s406_s28 = smov 8  }
   0xd   :  { %26 = dma.hbm_to_vmem [thread:$0]  %s486_s0, 256, %s21_s25, [#allocation3], %s405_s27, %s405_s27, %s406_s28  }
   0xe   :  { %s407_s8 = smov [#allocation5]  }
   0xf   :  { %s32_s9 = sshll.u32 %s407_s8, 4  ;;  %s33_s9 = int_to_ptr.vmem [resolvable:$true] %s32_s9 }
  0x10   :  { %s366_s10 = scalar_lea.vmem %s33_s9, 2048  ;;  %p371_p6 = scmp.lt.s32.totalorder %s33_s9, %s33_s9 }
  0x11   :  { %p367_p5 = scmp.ne.s32.totalorder %s33_s9, %s366_s10  ;;  %p372_p7 = scmp.lt.s32.totalorder %s366_s10, %s366_s10 }
  0x13   :  { %p373_p8 = por %p372_p7, %p371_p6 }
  0x15   :  { %p374_p9 = pnand %p373_p8, %p367_p5 }
  0x17   :  { %377 = shalt.err (!%p374_p9)
}
  0x18   :  { %38 = dma.hbm_to_vmem [thread:$0]  %s487_s1, 2048, %s33_s9, [#allocation6], %s405_s27, %s405_s27, %s406_s28  }
  0x19   :  { %398 = dma.done.wait [#allocation3], 256  }
  0x1a   :  { %399 = vsyncadd [#allocation3], 4294967040 }
  0x1b   :  { %400 = dma.done.wait [#allocation6], 2048  }
  0x1c   :  { %401 = vsyncadd [#allocation6], 4294965248  ;;  %v55_v0 = vld [vmem:[#allocation2] sm:$0xff]  ;;  %v56_v1 = vld [vmem:[#allocation2 + $0x8] sm:$0xff]  ;;  %v67_v3 = vlaneseq  ;;  %s408_s18 = smov [#allocation7]  }
  0x1d   :  { %59 = vadd.xlane.f32.xlu0 %v55_v0  ;;  %v119_v2 = vld [vmem:[#allocation5 + $0x78] sm:$0xff]  ;;  %v118_v15 = vld [vmem:[#allocation5 + $0x70] sm:$0xff]  ;;  %v117_v16 = vld [vmem:[#allocation5 + $0x68] sm:$0xff]  ;;  %s254_s19 = sshll.u32 %s408_s18, 4  ;;  %s255_s19 = int_to_ptr.vmem [resolvable:$true] %s254_s19 }
  0x1e   :  { %290 = vmatprep.subr.mxu0 %v119_v2  ;;  %v461_v4 = vand.u32 127, %v67_v3  ;;  %v116_v17 = vld [vmem:[#allocation5 + $0x60] sm:$0xff]  ;;  %v115_v18 = vld [vmem:[#allocation5 + $0x58] sm:$0xff]  ;;  %v114_v19 = vld [vmem:[#allocation5 + $0x50] sm:$0xff]  ;;  %s378_s20 = scalar_lea.vmem %s255_s19, 256  ;;  %p383_p11 = scmp.lt.s32.totalorder %s255_s19, %s255_s19 }
  0x1f   :  { %291 = vmatpush3.msra.mxu0 %v119_v2  ;;  %v113_v20 = vld [vmem:[#allocation5 + $0x48] sm:$0xff]  ;;  %v112_v21 = vld [vmem:[#allocation5 + $0x40] sm:$0xff]  ;;  %v111_v22 = vld [vmem:[#allocation5 + $0x38] sm:$0xff]  ;;  %p379_p10 = scmp.ne.s32.totalorder %s255_s19, %s378_s20  ;;  %p384_p12 = scmp.lt.s32.totalorder %s378_s20, %s378_s20 }
  0x20   :  { %vm69_vm0 = vcmp.lt.s32.totalorder %v461_v4, 32  ;;  %292 = vmatprep.subr.mxu0 %v118_v15  ;;  %v110_v23 = vld [vmem:[#allocation5 + $0x30] sm:$0xff]  ;;  %v109_v24 = vld [vmem:[#allocation5 + $0x28] sm:$0xff]  ;;  %v108_v25 = vld [vmem:[#allocation5 + $0x20] sm:$0xff]  ;;  %vm212_vm1 = vcmp.lt.s32.totalorder %v461_v4, 64 }
  0x21   :  { %61 = vadd.xlane.f32.xlu0 %v56_v1  ;;  %293 = vmatpush3.msra.mxu0 %v118_v15  ;;  %v107_v26 = vld [vmem:[#allocation5 + $0x18] sm:$0xff]  ;;  %v106_v27 = vld [vmem:[#allocation5 + $0x10] sm:$0xff]  ;;  %v105_v28 = vld [vmem:[#allocation5 + $0x8] sm:$0xff]  ;;  %p385_p13 = por %p384_p12, %p383_p11 }
  0x22   :  { %294 = vmatprep.subr.mxu0 %v117_v16  ;;  %v104_v29 = vld [vmem:[#allocation5] sm:$0xff]  ;;  %v267_v37 = vld [vmem:[%s489_s3] ss:$0 sm:$0xff] }
  0x23   :  { %295 = vmatpush3.msra.mxu0 %v117_v16  ;;  %v268_v39 = vld [vmem:[%s490_s4] ss:$0 sm:$0xff]  ;;  %p386_p0 = pnand %p385_p13, %p379_p10 }
  0x24   :  { %296 = vmatprep.subr.mxu0 %v116_v17  ;;  %v269_v48 = vld [vmem:[%s488_s2] ss:$0 sm:$0xff] }
  0x25   :  { %297 = vmatpush3.msra.mxu0 %v116_v17  ;;  %v270_v4 = vld [vmem:[%s491_s5] ss:$0 sm:$0xff] }
  0x26   :  { %298 = vmatprep.subr.mxu0 %v115_v18 }
  0x27   :  { %299 = vmatpush3.msra.mxu0 %v115_v18 }
  0x28   :  { %300 = vmatprep.subr.mxu0 %v114_v19 }
  0x29   :  { %301 = vmatpush3.msra.mxu0 %v114_v19 }
  0x2a   :  { %302 = vmatprep.subr.mxu0 %v113_v20 }
  0x2b   :  { %303 = vmatpush3.msra.mxu0 %v113_v20 }
  0x2c   :  { %304 = vmatprep.subr.mxu0 %v112_v21 }
  0x2d   :  { %305 = vmatpush3.msra.mxu0 %v112_v21 }
  0x2e   :  { %306 = vmatprep.subr.mxu0 %v111_v22 }
  0x2f   :  { %307 = vmatpush3.msra.mxu0 %v111_v22 }
  0x30   :  { %308 = vmatprep.subr.mxu0 %v110_v23 }
  0x31   :  { %309 = vmatpush3.msra.mxu0 %v110_v23 }
  0x32   :  { %310 = vmatprep.subr.mxu0 %v109_v24 }
  0x33   :  { %311 = vmatpush3.msra.mxu0 %v109_v24 }
  0x34   :  { %312 = vmatprep.subr.mxu0 %v108_v25 }
  0x35   :  { %313 = vmatpush3.msra.mxu0 %v108_v25 }
  0x36   :  { %314 = vmatprep.subr.mxu0 %v107_v26 }
  0x37   :  { %315 = vmatpush3.msra.mxu0 %v107_v26 }
  0x38   :  { %316 = vmatprep.subr.mxu0 %v106_v27 }
  0x39   :  { %317 = vmatpush3.msra.mxu0 %v106_v27 }
  0x3a   :  { %318 = vmatprep.subr.mxu0 %v105_v28 }
  0x3b   :  { %319 = vmatpush3.msra.mxu0 %v105_v28 }
  0x3c   :  { %320 = vmatprep.subr.mxu0 %v104_v29 }
  0x3d   :  { %321 = vmatpush3.msra.mxu0 %v104_v29 }
  0xa6   :  { %v60_v5 = vpop.xlane.xlu0 %59 }
  0xa7   :  { %v63_v6 = vmul.f32 0.03125, %v60_v5 }
  0xa9   :  { %v65_v7 = vsub.f32 %v55_v0, %v63_v6 }
  0xaa   :  { %v62_v8 = vpop.xlane.xlu0 %61 }
  0xab   :  { %v64_v9 = vmul.f32 0.03125, %v62_v8  ;;  %v70_v10 = vsel %vm69_vm0, %v65_v7, 0.0 }
  0xac   :  { %v72_v11 = vmul.f32 %v70_v10, %v70_v10 }
  0xad   :  { %v66_v12 = vsub.f32 %v56_v1, %v64_v9  ;;  %v271_v9 = vld [vmem:[%s492_s6] ss:$0 sm:$0xff] }
  0xae   :  { %74 = vadd.xlane.f32.xlu1 %v72_v11 }
  0xaf   :  { %v71_v13 = vsel %vm69_vm0, %v66_v12, 0.0 }
  0xb0   :  { %v73_v14 = vmul.f32 %v71_v13, %v71_v13 }
  0xb2   :  { %76 = vadd.xlane.f32.xlu1 %v73_v14 }
 0x137   :  { %v75_v30 = vpop.xlane.xlu1 %74 }
 0x138   :  { %v78_v31 = vmul.f32 0.03125, %v75_v30 }
 0x13a   :  { %v80_v32 = vadd.f32 1e-05, %v78_v31 }
 0x13b   :  { %v77_v33 = vpop.xlane.xlu1 %76 }
 0x13c   :  { %330 = vrsqrt.f32 %v80_v32  ;;  %v79_v34 = vmul.f32 0.03125, %v77_v33 }
 0x13e   :  { %v81_v35 = vadd.f32 1e-05, %v79_v34 }
 0x140   :  { %332 = vrsqrt.f32 %v81_v35 }
 0x149   :  { %v331_v36 = vpop.eup %330 }
 0x14a   :  { %v84_v38 = vmul.f32 %v331_v36, %v70_v10 }
 0x14c   :  { %v92_v40 = vmul.f32 %v267_v37, %v84_v38 }
 0x14d   :  { %v333_v41 = vpop.eup %332 }
 0x14e   :  { %v85_v42 = vmul.f32 %v333_v41, %v71_v13  ;;  %v100_v43 = vadd.f32 %v268_v39, %v92_v40 }
 0x150   :  { %v93_v44 = vmul.f32 %v267_v37, %v85_v42  ;;  %v102_v45 = vmax.f32 %v100_v43, 0.0 }
 0x152   :  { %v101_v46 = vadd.f32 %v268_v39, %v93_v44  ;;  %322 = vmatprep.mubr.f32.mxu0 %v102_v45 }
 0x154   :  { %v103_v47 = vmax.f32 %v101_v46, 0.0 }
 0x156   :  { %323 = vmatmul.mubr.f32.vlgmr.msra.gmra.mxu0 %v103_v47 }
 0x216   :  { %v324_v49 = vpop.f32.mrf.mxu0 }
 0x217   :  { %v199_v50 = vadd.f32 %v324_v49, %v269_v48 }
 0x218   :  { %v193_v51 = vpop.f32.mrf.mxu0 }
 0x219   :  { %v194_v52 = vadd.f32 %v269_v48, %v193_v51  ;;  %206 = vadd.xlane.f32.xlu1 %v199_v50 }
 0x21b   :  { %204 = vadd.xlane.f32.xlu0 %v194_v52 }
 0x2a2   :  { %v207_v53 = vpop.xlane.xlu1 %206 }
 0x2a3   :  { %v209_v54 = vmul.f32 0.015625, %v207_v53 }
 0x2a4   :  { %v205_v55 = vpop.xlane.xlu0 %204 }
 0x2a5   :  { %v211_v56 = vsub.f32 %v199_v50, %v209_v54  ;;  %v208_v57 = vmul.f32 0.015625, %v205_v55 }
 0x2a7   :  { %v210_v58 = vsub.f32 %v194_v52, %v208_v57  ;;  %v214_v59 = vsel %vm212_vm1, %v211_v56, 0.0 }
 0x2a8   :  { %v216_v60 = vmul.f32 %v214_v59, %v214_v59 }
 0x2a9   :  { %v213_v61 = vsel %vm212_vm1, %v210_v58, 0.0 }
 0x2aa   :  { %219 = vadd.xlane.f32.xlu1 %v216_v60  ;;  %v215_v62 = vmul.f32 %v213_v61, %v213_v61 }
 0x2ac   :  { %217 = vadd.xlane.f32.xlu0 %v215_v62 }
 0x333   :  { %v220_v63 = vpop.xlane.xlu1 %219 }
 0x334   :  { %v222_v0 = vmul.f32 0.015625, %v220_v63 }
 0x335   :  { %v218_v1 = vpop.xlane.xlu0 %217 }
 0x336   :  { %v224_v2 = vadd.f32 1e-05, %v222_v0  ;;  %v221_v3 = vmul.f32 0.015625, %v218_v1 }
 0x338   :  { %334 = vrsqrt.f32 %v224_v2  ;;  %v223_v5 = vadd.f32 1e-05, %v221_v3 }
 0x33a   :  { %336 = vrsqrt.f32 %v223_v5 }
 0x345   :  { %v335_v6 = vpop.eup %334 }
 0x346   :  { %v228_v7 = vmul.f32 %v335_v6, %v214_v59 }
 0x347   :  { %v337_v8 = vpop.eup %336 }
 0x348   :  { %v227_v10 = vmul.f32 %v337_v8, %v213_v61  ;;  %v236_v11 = vmul.f32 %v270_v4, %v228_v7 }
 0x34a   :  { %v235_v12 = vmul.f32 %v270_v4, %v227_v10  ;;  %v244_v13 = vadd.f32 %v271_v9, %v236_v11 }
 0x34c   :  { %v243_v14 = vadd.f32 %v271_v9, %v235_v12  ;;  %v246_v15 = vmax.f32 %v244_v13, 0.0 }
 0x34e   :  { %v245_v16 = vmax.f32 %v243_v14, 0.0  ;;  %248 = vst [vmem:[#allocation7 + $0x8] sm:$0xff] %v246_v15 }
 0x350   :  { %247 = vst [vmem:[#allocation7] sm:$0xff] %v245_v16 }
 0x351   :  { %389 = shalt.err (!%p386_p0)
}
 0x352   :  { %260 = dma.vmem_to_hbm [thread:$0]  %s255_s19, 256, %s493_s7, [#allocation4], %s405_s27, %s405_s27, %s406_s28  }
 0x353   :  { %402 = dma.done.wait [#allocation4], 256  }
 0x354   :  { %403 = vsyncadd [#allocation4], 4294967040 }
 0x355   :  { %264 = vsyncpa [#allocation3], 1 }
 0x356   :  { %265 = vsyncpa [#allocation6], 1 }
 0x357   :  { %266 = vsyncpa [#allocation4], 1 }

</bundles_post_ra>
